<compile_context>
chip_gen: v5e
topology: v5e:2x2
jax: 0.10.0
libtpu: 0.0.40
codegen_flags: <defaults>
</compile_context>

<pallas_src>
import functools
import math

import jax
import jax.numpy as jnp
from jax import lax
from jax.experimental import pallas as pl
from jax.experimental.pallas import tpu as pltpu

EPS = 1e-5                       # nn.InstanceNorm1d default
_ACT_DTYPE = jnp.bfloat16        # storage dtype for internal inter-level tensors
_COMPUTE_DTYPE = jnp.bfloat16    # MXU input dtype
_VMEM_LIMIT = 48 * 1024 * 1024   # <= physical VMEM on v7x, headroom everywhere
_ACT_BUDGET = 16 * 1024 * 1024   # per-step activation bytes (2x buffered ~ 32MB)

_COMPILER_PARAMS = pltpu.CompilerParams(
    dimension_semantics=("parallel",),        # batch axis shards across TCs
    vmem_limit_bytes=_VMEM_LIMIT)


# ----------------------------------------------------------------------------
# One-time, compile-only capability check for sublane-strided ref indexing
# (used by the fused upsample / maxpool paths).  No device execution; cached.
# ----------------------------------------------------------------------------
_STRIDED_OK = None


def _strided_supported():
    global _STRIDED_OK
    if _STRIDED_OK is not None:
        return _STRIDED_OK

    def k(x_ref, o_ref, buf_ref):
        a = x_ref[:, pl.ds(0, 4, stride=2), :]
        b = x_ref[:, pl.ds(1, 4, stride=2), :]
        buf_ref[:, pl.ds(0, 4, stride=2), :] = a + b
        buf_ref[:, pl.ds(1, 4, stride=2), :] = b
        o_ref[...] = buf_ref[...]

    try:
        f = pl.pallas_call(
            k,
            out_shape=jax.ShapeDtypeStruct((1, 8, 128), jnp.float32),
            scratch_shapes=[pltpu.VMEM((1, 8, 128), jnp.float32)])
        jax.jit(f).lower(
            jax.ShapeDtypeStruct((1, 8, 128), jnp.float32)).compile()
        _STRIDED_OK = True
    except Exception:
        _STRIDED_OK = False
    return _STRIDED_OK


# ----------------------------------------------------------------------------
# Kernels
# ----------------------------------------------------------------------------
def _instance_norm_relu(y, g_ref, beta_ref):
    # y: (Bt, L, C) f32; per-sample per-channel stats over the L axis.
    c = y.shape[-1]
    mean = jnp.mean(y, axis=1, keepdims=True)
    var = jnp.mean(jnp.square(y - mean), axis=1, keepdims=True)
    y = (y - mean) * lax.rsqrt(var + EPS)
    y = y * g_ref[...].reshape(1, 1, c) + beta_ref[...].reshape(1, 1, c)
    return jnp.maximum(y, 0.0)


def _cna_k1_kernel(x_ref, w_ref, b_ref, g_ref, beta_ref, o_ref, *,
                   residual, compute_dtype):
    # x_ref: (Bt, L, Cin);  w_ref: (Cin, Cout) bf16
    x = x_ref[...]
    bt_n, l, cin = x.shape
    cout = w_ref.shape[-1]
    y = jnp.dot(x.reshape(bt_n * l, cin).astype(compute_dtype), w_ref[...],
                preferred_element_type=jnp.float32)
    y = y + b_ref[...]                                   # (1, Cout) f32
    y = _instance_norm_relu(y.reshape(bt_n, l, cout), g_ref, beta_ref)
    if residual:                                         # only when Cin == Cout
        y = y + x.astype(jnp.float32)
    o_ref[...] = y.astype(o_ref.dtype)


def _cna_k3_kernel(*refs, num_plain, has_pool, has_up, compute_dtype):
    n_in = num_plain + int(has_pool) + int(has_up)
    in_refs = refs[:n_in]
    w_ref, b_ref, g_ref, beta_ref, o_ref = refs[n_in:n_in + 5]
    up_buf = refs[n_in + 5] if has_up else None

    bt_n, l, c = o_ref.shape
    m = bt_n * l
    f32 = jnp.float32

    # (M, 1) per-sample row position -> cheap lane-broadcast boundary masks.
    t = lax.broadcasted_iota(jnp.int32, (m, 1), 0) % l
    is_first = t == 0
    is_last = t == (l - 1)

    idx = 0
    parts = []
    if has_pool:
        # fused MaxPool1d(kernel=3, stride=2, padding=1) of the (2L)-long
        # previous bottom-up feature: pooled[t] = max(d[2t-1], d[2t], d[2t+1]).
        d_ref = in_refs[idx]; idx += 1
        d_even = d_ref[:, pl.ds(0, l, stride=2), :].astype(f32).reshape(m, c)
        d_odd = d_ref[:, pl.ds(1, l, stride=2), :].astype(f32).reshape(m, c)
        prev_odd = jnp.where(is_first, -jnp.inf, jnp.roll(d_odd, 1, axis=0))
        parts.append(jnp.maximum(jnp.maximum(prev_odd, d_even), d_odd))
    if has_up:
        # fused nearest 2x upsample: interleave the (Bt, L/2, C) coarse block
        # into a (Bt, L, C) VMEM scratch with two sublane-strided stores.
        u_ref = in_refs[idx]; idx += 1
        lc = u_ref.shape[1]
        u = u_ref[...].astype(f32)
        up_buf[:, pl.ds(0, lc, stride=2), :] = u
        up_buf[:, pl.ds(1, lc, stride=2), :] = u
        parts.append(up_buf[...].reshape(m, c))
    for _ in range(num_plain):
        parts.append(in_refs[idx][...].astype(f32).reshape(m, c))
        idx += 1

    # fused FPN merge-node add (f32)
    x = parts[0]
    for p in parts[1:]:
        x = x + p

    # conv k=3 as ONE stacked (M, C) x (C, 3C) matmul; shift/mask the three
    # output slabs by +/-1 row (per sample) and sum.
    s = jnp.dot(x.astype(compute_dtype), w_ref[...],
                preferred_element_type=f32)
    y = (jnp.where(is_first, 0.0, jnp.roll(s[:, :c], 1, axis=0))
         + s[:, c:2 * c]
         + jnp.where(is_last, 0.0, jnp.roll(s[:, 2 * c:], -1, axis=0)))
    y = y + b_ref[...]                                   # (1, C) f32
    y = _instance_norm_relu(y.reshape(bt_n, l, c), g_ref, beta_ref)
    o_ref[...] = y.astype(o_ref.dtype)


# ----------------------------------------------------------------------------
# pallas_call builders
# ----------------------------------------------------------------------------
def _resident_spec(a):
    nd = a.ndim
    return pl.BlockSpec(a.shape, lambda i, _nd=nd: (0,) * _nd)


def _pick_batch_tile(n, l, c, rows_factor, budget_bytes=_ACT_BUDGET):
    """Largest divisor of n whose activation blocks fit the VMEM budget, capped
    at n//2 so the single 'parallel' grid axis has >= 2 steps (keeps both v7x
    TensorCores busy and gives the pipeline something to overlap)."""
    per_sample = max(1, int(l * c * 4 * rows_factor))
    bt = max(1, min(n, budget_bytes // per_sample))
    if n >= 2:
        bt = min(bt, n // 2)
    bt = max(1, bt)
    while n % bt:
        bt -= 1
    return bt


def conv_norm_act_1x1(x, w, b, g, beta, *, residual, out_dtype,
                      compute_dtype=_COMPUTE_DTYPE):
    n, l, cin = x.shape
    cout = w.shape[-1]
    bt = _pick_batch_tile(n, l, max(cin, cout), 2.0)
    kernel = functools.partial(_cna_k1_kernel, residual=residual,
                               compute_dtype=compute_dtype)
    return pl.pallas_call(
        kernel,
        out_shape=jax.ShapeDtypeStruct((n, l, cout), out_dtype),
        grid_spec=pltpu.PrefetchScalarGridSpec(
            num_scalar_prefetch=0,
            grid=(n // bt,),
            in_specs=[pl.BlockSpec((bt, l, cin), lambda i: (i, 0, 0)),
                      _resident_spec(w), _resident_spec(b),
                      _resident_spec(g), _resident_spec(beta)],
            out_specs=pl.BlockSpec((bt, l, cout), lambda i: (i, 0, 0))),
        compiler_params=_COMPILER_PARAMS,
    )(x, w, b, g, beta)


def conv_norm_act_k3(plain, w, b, g, beta, *, pool_src=None, up_src=None,
                     out_dtype, compute_dtype=_COMPUTE_DTYPE):
    n, l, c = plain[0].shape
    rows = len(plain) + 1.0                      # plain inputs + output
    if pool_src is not None:
        assert pool_src.shape == (n, 2 * l, c)
        rows += 2.0
    if up_src is not None:
        assert up_src.shape == (n, l // 2, c)
        rows += 0.5 + 1.0                        # coarse block + f32 scratch
    bt = _pick_batch_tile(n, l, c, rows)

    arrays, in_specs = [], []
    if pool_src is not None:
        arrays.append(pool_src)
        in_specs.append(pl.BlockSpec((bt, 2 * l, c), lambda i: (i, 0, 0)))
    if up_src is not None:
        arrays.append(up_src)
        in_specs.append(pl.BlockSpec((bt, l // 2, c), lambda i: (i, 0, 0)))
    for p in plain:
        assert p.shape == (n, l, c)
        arrays.append(p)
        in_specs.append(pl.BlockSpec((bt, l, c), lambda i: (i, 0, 0)))
    arrays += [w, b, g, beta]
    in_specs += [_resident_spec(w), _resident_spec(b),
                 _resident_spec(g), _resident_spec(beta)]
    scratch = ([pltpu.VMEM((bt, l, c), jnp.float32)]
               if up_src is not None else [])

    kernel = functools.partial(
        _cna_k3_kernel, num_plain=len(plain),
        has_pool=pool_src is not None, has_up=up_src is not None,
        compute_dtype=compute_dtype)
    return pl.pallas_call(
        kernel,
        out_shape=jax.ShapeDtypeStruct((n, l, c), out_dtype),
        grid_spec=pltpu.PrefetchScalarGridSpec(
            num_scalar_prefetch=0,
            grid=(n // bt,),
            in_specs=in_specs,
            out_specs=pl.BlockSpec((bt, l, c), lambda i: (i, 0, 0)),
            scratch_shapes=scratch),
        compiler_params=_COMPILER_PARAMS,
    )(*arrays)


# ----------------------------------------------------------------------------
# FPN forward (Pallas). All tensors are NLC: (N, L_i, C).
# ----------------------------------------------------------------------------
def _upsample2x_nlc(x):    # fallback only (strided ref indexing unavailable)
    return jnp.repeat(x, 2, axis=1)


def _maxpool3s2p1_nlc(x):  # fallback only
    return lax.reduce_window(x, -jnp.inf, lax.max, (1, 3, 1), (1, 2, 1),
                             ((0, 0), (1, 1), (0, 0)))


def fpn_pallas(inputs_nlc, kparams, *, first_time=True,
               act_dtype=_ACT_DTYPE, compute_dtype=_COMPUTE_DTYPE):
    """inputs_nlc: per-level (N, L_i, C_in) arrays; kparams from
    prepare_fpn_params.  Returns [d_0, ..., d_{levels-1}] in float32; internal
    inter-level tensors are stored as bfloat16."""
    levels = len(inputs_nlc)
    fused = _strided_supported()

    if first_time:
        feats = []
        for x, (w, b, g, beta) in zip(inputs_nlc, kparams["down_channel"]):
            residual = (w.shape[0] == w.shape[1])   # torch shape-test condition
            feats.append(conv_norm_act_1x1(
                x, w, b, g, beta, residual=residual, out_dtype=act_dtype,
                compute_dtype=compute_dtype))
    else:
        feats = list(inputs_nlc)

    # top-down path
    up = [None] * levels
    up[levels - 1] = feats[levels - 1]
    for i in range(levels - 2, -1, -1):
        w, b, g, beta = kparams["conv_up"][i]
        out_dtype = jnp.float32 if i == 0 else act_dtype  # up[0] is returned
        if fused:
            up[i] = conv_norm_act_k3([feats[i]], w, b, g, beta,
                                     up_src=up[i + 1], out_dtype=out_dtype,
                                     compute_dtype=compute_dtype)
        else:
            up[i] = conv_norm_act_k3([feats[i], _upsample2x_nlc(up[i + 1])],
                                     w, b, g, beta, out_dtype=out_dtype,
                                     compute_dtype=compute_dtype)

    # bottom-up path (every output is returned -> float32)
    down = [up[0]]
    for i in range(1, levels):
        w, b, g, beta = kparams["conv_down"][i - 1]
        plain = [feats[i]] if i == levels - 1 else [up[i], feats[i]]
        if fused:
            down.append(conv_norm_act_k3(plain, w, b, g, beta,
                                         pool_src=down[i - 1],
                                         out_dtype=jnp.float32,
                                         compute_dtype=compute_dtype))
        else:
            down.append(conv_norm_act_k3(
                [_maxpool3s2p1_nlc(down[i - 1])] + plain, w, b, g, beta,
                out_dtype=jnp.float32, compute_dtype=compute_dtype))
    return down


# ----------------------------------------------------------------------------
# Parameters
# ----------------------------------------------------------------------------
def init_params(key, base_dim, feat_dim, levels, first_time=True):
    """Deterministic synthetic FPN parameters (PyTorch-like init).
    Conv weights stored MXU-friendly:
      k=1 : (Cin, Cout)       (= torch_weight[:, :, 0].T)
      k=3 : (3, Cin, Cout)    (w[k, ci, co] = torch_weight[co, ci, k])."""
    n_layers = (levels if first_time else 0) + 2 * (levels - 1)
    keys = jax.random.split(key, 2 * n_layers)
    it = iter(range(2 * n_layers))

    def cna(cin, cout, ksize):
        s = 1.0 / math.sqrt(ksize * cin)
        shape = (cin, cout) if ksize == 1 else (ksize, cin, cout)
        w = jax.random.uniform(keys[next(it)], shape, jnp.float32, -s, s)
        b = jax.random.uniform(keys[next(it)], (1, cout), jnp.float32, -s, s)
        return (w, b, jnp.ones((1, cout), jnp.float32),
                jnp.zeros((1, cout), jnp.float32))

    params = {"down_channel": [], "conv_up": [], "conv_down": []}
    if first_time:
        for _ in range(levels):
            params["down_channel"].append(cna(base_dim, feat_dim, 1))
    for _ in range(levels - 1):
        params["conv_up"].append(cna(feat_dim, feat_dim, 3))
    for _ in range(levels - 1):
        params["conv_down"].append(cna(feat_dim, feat_dim, 3))
    return params


def prepare_fpn_params(params, compute_dtype=_COMPUTE_DTYPE):
    """One-time weight prep, hoisted out of the forward path:
    cast conv weights to bf16; lane-stack k=3 weights to (Cin, 3*Cout)."""
    prep = {"down_channel": [], "conv_up": [], "conv_down": []}
    for w, b, g, beta in params.get("down_channel", []):
        prep["down_channel"].append((w.astype(compute_dtype), b, g, beta))
    for name in ("conv_up", "conv_down"):
        for w, b, g, beta in params[name]:
            ws = jnp.concatenate([w[0], w[1], w[2]], axis=1)   # (Cin, 3*Cout)
            prep[name].append((ws.astype(compute_dtype), b, g, beta))
    return prep


# ----------------------------------------------------------------------------
# Pure-JAX reference mirroring the PyTorch module (NCL layout).
# compute_dtype / act_dtype allow a precision-matched (bf16) reference.
# ----------------------------------------------------------------------------
def _conv_norm_act_ref(x_ncl, w_oih, b, g, beta, *, padding, residual,
                       compute_dtype):
    xin = x_ncl
    y = lax.conv_general_dilated(
        x_ncl.astype(compute_dtype), w_oih.astype(compute_dtype),
        window_strides=(1,), padding=((padding, padding),),
        dimension_numbers=("NCH", "OIH", "NCH"),
        preferred_element_type=jnp.float32)
    y = y + b.reshape(1, -1, 1)
    if y.shape[2] > 1:                     # module skips norm when L == 1
        mean = jnp.mean(y, axis=2, keepdims=True)
        var = jnp.mean(jnp.square(y - mean), axis=2, keepdims=True)
        y = (y - mean) * lax.rsqrt(var + EPS)
        y = y * g.reshape(1, -1, 1) + beta.reshape(1, -1, 1)
    y = jnp.maximum(y, 0.0)
    if residual:
        y = y + xin
    return y


def fpn_ref(inputs_ncl, params, *, first_time=True, compute_dtype=jnp.float32,
            act_dtype=None):
    def q(x):   # mimic bf16 storage of internal Pallas tensors
        return x if act_dtype is None else x.astype(act_dtype).astype(jnp.float32)

    levels = len(inputs_ncl)
    feats = list(inputs_ncl)
    if first_time:
        new = []
        for x, (w, b, g, beta) in zip(feats, params["down_channel"]):
            w_oih = jnp.transpose(w, (1, 0))[:, :, None]      # (Cout, Cin, 1)
            new.append(q(_conv_norm_act_ref(
                x, w_oih, b[0], g[0], beta[0], padding=0,
                residual=(w.shape[0] == w.shape[1]),
                compute_dtype=compute_dtype)))
        feats = new

    up = [feats[-1]]
    for i in range(levels - 2, -1, -1):
        u = jnp.repeat(up[-1], 2, axis=2)
        w, b, g, beta = params["conv_up"][i]
        w_oih = jnp.transpose(w, (2, 1, 0))                   # (Cout, Cin, 3)
        res = _conv_norm_act_ref(feats[i] + u, w_oih, b[0], g[0], beta[0],
                                 padding=1, residual=False,
                                 compute_dtype=compute_dtype)
        up.append(res if i == 0 else q(res))
    up = list(reversed(up))

    down = [up[0]]
    for i in range(1, levels):
        d = lax.reduce_window(down[-1], -jnp.inf, lax.max,
                              (1, 1, 3), (1, 1, 2),
                              ((0, 0), (0, 0), (1, 1)))
        s = d + feats[i] if i == levels - 1 else d + up[i] + feats[i]
        w, b, g, beta = params["conv_down"][i - 1]
        w_oih = jnp.transpose(w, (2, 1, 0))
        down.append(_conv_norm_act_ref(s, w_oih, b[0], g[0], beta[0],
                                       padding=1, residual=False,
                                       compute_dtype=compute_dtype))
    return down


# ----------------------------------------------------------------------------
if __name__ == "__main__":
    key = jax.random.PRNGKey(0)
    k_in, k_par = jax.random.split(key)

    N = 2
    BASE_DIM = 64        # per-level input channels (first_time=True)
    FEAT_DIM = 128       # FPN feature channels (lane-dense)
    LEVELS = 3
    L0 = 64              # finest temporal length; halves per level

    lengths = [L0 // (2 ** i) for i in range(LEVELS)]
    in_keys = jax.random.split(k_in, LEVELS)
    # The Pallas path is NLC-native: no transposes anywhere inside the FPN.
    inputs_nlc = [jax.random.normal(in_keys[i], (N, lengths[i], BASE_DIM),
                                    jnp.float32) for i in range(LEVELS)]

    params = init_params(k_par, BASE_DIM, FEAT_DIM, LEVELS, first_time=True)
    kparams = prepare_fpn_params(params)              # one-time weight prep

    outs = fpn_pallas(inputs_nlc, kparams, first_time=True)
    outs = jax.block_until_ready(outs)

    # References mirror the PyTorch module in NCL layout.
    inputs_ncl = [jnp.transpose(x, (0, 2, 1)) for x in inputs_nlc]
    ref_match = fpn_ref(inputs_ncl, params, first_time=True,
                        compute_dtype=jnp.bfloat16,
                        act_dtype=jnp.bfloat16)       # precision-matched
    ref_f32 = fpn_ref(inputs_ncl, params, first_time=True,
                      compute_dtype=jnp.float32)      # full-precision sanity

    for lvl in range(LEVELS):
        o = outs[lvl]
        rm = jnp.transpose(ref_match[lvl], (0, 2, 1))
        rf = jnp.transpose(ref_f32[lvl], (0, 2, 1))
        assert o.shape == (N, lengths[lvl], FEAT_DIM), (lvl, o.shape)
        assert o.dtype == jnp.float32, (lvl, o.dtype)
        err_m = float(jnp.max(jnp.abs(o - rm)))
        err_f = float(jnp.max(jnp.abs(o - rf)))
        # exact-semantics check vs. the precision-matched (bf16) reference
        assert err_m < 2e-2, (lvl, err_m)
        # loose sanity vs. the pure-f32 reference (bounds bf16 quantization)
        assert err_f < 0.25, (lvl, err_f)

    print("KERNEL_OK")
</pallas_src>

<mosaic_0001>
module attributes {stable_mosaic.version = 11 : i64} {
  func.func @_cna_k1_kernel(%arg0: i32, %arg1: memref<1x64x64xf32, #tpu.memory_space<vmem>>, %arg2: memref<64x128xbf16, #tpu.memory_space<vmem>>, %arg3: memref<1x128xf32, #tpu.memory_space<vmem>>, %arg4: memref<1x128xf32, #tpu.memory_space<vmem>>, %arg5: memref<1x128xf32, #tpu.memory_space<vmem>>, %arg6: memref<1x64x128xbf16, #tpu.memory_space<vmem>>) attributes {dimension_semantics = [#tpu.dimension_semantics<parallel>], iteration_bounds = array<i64: 2>, scalar_prefetch = 0 : i64, scratch_operands = 0 : i64, tpu.core_type = #tpu.core_type<tc>, window_params = [{transform_indices = @transform_0, window_bounds = array<i64: 1, 64, 64>}, {pipeline_mode = #tpu.pipeline_mode<synchronous>, transform_indices = @transform_1, window_bounds = array<i64: 64, 128>}, {pipeline_mode = #tpu.pipeline_mode<synchronous>, transform_indices = @transform_2, window_bounds = array<i64: 1, 128>}, {pipeline_mode = #tpu.pipeline_mode<synchronous>, transform_indices = @transform_3, window_bounds = array<i64: 1, 128>}, {pipeline_mode = #tpu.pipeline_mode<synchronous>, transform_indices = @transform_4, window_bounds = array<i64: 1, 128>}, {transform_indices = @transform_5, window_bounds = array<i64: 1, 64, 128>}]} {
    %c0 = arith.constant 0 : index
    %c0_0 = arith.constant 0 : index
    %c0_1 = arith.constant 0 : index
    %0 = vector.load %arg1[%c0, %c0_0, %c0_1] : memref<1x64x64xf32, #tpu.memory_space<vmem>>, vector<1x64x64xf32>
    %1 = vector.shape_cast %0 : vector<1x64x64xf32> to vector<64x64xf32>
    %2 = arith.truncf %1 : vector<64x64xf32> to vector<64x64xbf16>
    %c0_2 = arith.constant 0 : index
    %c0_3 = arith.constant 0 : index
    %3 = vector.load %arg2[%c0_2, %c0_3] : memref<64x128xbf16, #tpu.memory_space<vmem>>, vector<64x128xbf16>
    %cst = arith.constant dense<0.000000e+00> : vector<64x128xf32>
    %4 = tpu.matmul %2, %3, %cst {dimension_numbers = #tpu.dot_dimension_numbers<[1], [0], [0], [1], [0, 0, 1, 1], [], []>} : vector<64x64xbf16>, vector<64x128xbf16>, vector<64x128xf32> -> vector<64x128xf32>
    %c0_4 = arith.constant 0 : index
    %c0_5 = arith.constant 0 : index
    %5 = vector.load %arg3[%c0_4, %c0_5] : memref<1x128xf32, #tpu.memory_space<vmem>>, vector<1x128xf32>
    %6 = vector.broadcast %5 : vector<1x128xf32> to vector<64x128xf32>
    %7 = arith.addf %4, %6 : vector<64x128xf32>
    %8 = vector.shape_cast %7 : vector<64x128xf32> to vector<1x64x128xf32>
    %cst_6 = arith.constant dense<0.000000e+00> : vector<1x128xf32>
    %9 = vector.multi_reduction <add>, %8, %cst_6 [1] : vector<1x64x128xf32> to vector<1x128xf32>
    %10 = vector.shape_cast %9 : vector<1x128xf32> to vector<1x1x128xf32>
    %cst_7 = arith.constant 6.400000e+01 : f32
    %11 = vector.broadcast %cst_7 : f32 to vector<1x1x128xf32>
    %12 = arith.divf %10, %11 : vector<1x1x128xf32>
    %13 = vector.broadcast %12 : vector<1x1x128xf32> to vector<1x64x128xf32>
    %14 = arith.subf %8, %13 : vector<1x64x128xf32>
    %15 = arith.mulf %14, %14 : vector<1x64x128xf32>
    %cst_8 = arith.constant dense<0.000000e+00> : vector<1x128xf32>
    %16 = vector.multi_reduction <add>, %15, %cst_8 [1] : vector<1x64x128xf32> to vector<1x128xf32>
    %17 = vector.shape_cast %16 : vector<1x128xf32> to vector<1x1x128xf32>
    %cst_9 = arith.constant 6.400000e+01 : f32
    %18 = vector.broadcast %cst_9 : f32 to vector<1x1x128xf32>
    %19 = arith.divf %17, %18 : vector<1x1x128xf32>
    %20 = vector.broadcast %12 : vector<1x1x128xf32> to vector<1x64x128xf32>
    %21 = arith.subf %8, %20 : vector<1x64x128xf32>
    %cst_10 = arith.constant 9.99999974E-6 : f32
    %22 = vector.broadcast %cst_10 : f32 to vector<1x1x128xf32>
    %23 = arith.addf %19, %22 : vector<1x1x128xf32>
    %24 = math.rsqrt %23 : vector<1x1x128xf32>
    %25 = vector.broadcast %24 : vector<1x1x128xf32> to vector<1x64x128xf32>
    %26 = arith.mulf %21, %25 : vector<1x64x128xf32>
    %c0_11 = arith.constant 0 : index
    %c0_12 = arith.constant 0 : index
    %27 = vector.load %arg4[%c0_11, %c0_12] : memref<1x128xf32, #tpu.memory_space<vmem>>, vector<1x128xf32>
    %28 = vector.shape_cast %27 : vector<1x128xf32> to vector<1x1x128xf32>
    %29 = vector.broadcast %28 : vector<1x1x128xf32> to vector<1x64x128xf32>
    %30 = arith.mulf %26, %29 : vector<1x64x128xf32>
    %c0_13 = arith.constant 0 : index
    %c0_14 = arith.constant 0 : index
    %31 = vector.load %arg5[%c0_13, %c0_14] : memref<1x128xf32, #tpu.memory_space<vmem>>, vector<1x128xf32>
    %32 = vector.shape_cast %31 : vector<1x128xf32> to vector<1x1x128xf32>
    %33 = vector.broadcast %32 : vector<1x1x128xf32> to vector<1x64x128xf32>
    %34 = arith.addf %30, %33 : vector<1x64x128xf32>
    %cst_15 = arith.constant 0.000000e+00 : f32
    %35 = vector.broadcast %cst_15 : f32 to vector<1x64x128xf32>
    %36 = arith.maximumf %34, %35 : vector<1x64x128xf32>
    %37 = arith.truncf %36 : vector<1x64x128xf32> to vector<1x64x128xbf16>
    %c0_16 = arith.constant 0 : index
    %c0_17 = arith.constant 0 : index
    %c0_18 = arith.constant 0 : index
    %38 = vector.load %arg6[%c0_16, %c0_17, %c0_18] : memref<1x64x128xbf16, #tpu.memory_space<vmem>>, vector<1x64x128xbf16>
    tpu.vector_store %arg6[%c0_16, %c0_17, %c0_18], %37 {strides = array<i32>} : memref<1x64x128xbf16, #tpu.memory_space<vmem>>, vector<1x64x128xbf16>,
    return
  }
  func.func @transform_0(%arg0: i32) -> (i32, i32, i32) {
    %c0_i32 = arith.constant 0 : i32
    %c0_i32_0 = arith.constant 0 : i32
    %c0_i32_1 = arith.constant 0 : i32
    return %arg0, %c0_i32, %c0_i32_0 : i32, i32, i32
  }
  func.func @transform_1(%arg0: i32) -> (i32, i32) {
    %c0_i32 = arith.constant 0 : i32
    %c0_i32_0 = arith.constant 0 : i32
    %c0_i32_1 = arith.constant 0 : i32
    return %c0_i32, %c0_i32_0 : i32, i32
  }
  func.func @transform_2(%arg0: i32) -> (i32, i32) {
    %c0_i32 = arith.constant 0 : i32
    %c0_i32_0 = arith.constant 0 : i32
    %c0_i32_1 = arith.constant 0 : i32
    return %c0_i32, %c0_i32_0 : i32, i32
  }
  func.func @transform_3(%arg0: i32) -> (i32, i32) {
    %c0_i32 = arith.constant 0 : i32
    %c0_i32_0 = arith.constant 0 : i32
    %c0_i32_1 = arith.constant 0 : i32
    return %c0_i32, %c0_i32_0 : i32, i32
  }
  func.func @transform_4(%arg0: i32) -> (i32, i32) {
    %c0_i32 = arith.constant 0 : i32
    %c0_i32_0 = arith.constant 0 : i32
    %c0_i32_1 = arith.constant 0 : i32
    return %c0_i32, %c0_i32_0 : i32, i32
  }
  func.func @transform_5(%arg0: i32) -> (i32, i32, i32) {
    %c0_i32 = arith.constant 0 : i32
    %c0_i32_0 = arith.constant 0 : i32
    %c0_i32_1 = arith.constant 0 : i32
    return %arg0, %c0_i32, %c0_i32_0 : i32, i32, i32
  }
}

</mosaic_0001>

<bundles_post_ra>
// kernel: tpu_custom_call.1
= control target key start
LH: loop header
LB: loop body
LE: loop exit
PB: predicated region body
PF: predicated region fallthrough
CT: control target
= control target key end

     0   :  { %10 = vsyncpa [#allocation3], 0  ;;  %s1040_s0 = inlined_call_operand.hbm [shape: f32[2,64,64], index: 0, kind: input, shape index: {}]   ;;  %s1041_s1 = inlined_call_operand.hbm [shape: bf16[64,128], index: 1, kind: input, shape index: {}]   ;;  %s1042_s2 = inlined_call_operand.vmem [shape: f32[1,128], index: 2, kind: input, shape index: {}]   ;;  %s1043_s3 = inlined_call_operand.vmem [shape: f32[1,128], index: 3, kind: input, shape index: {}]   ;;  %s1044_s4 = inlined_call_operand.vmem [shape: f32[1,128], index: 4, kind: input, shape index: {}]   ;;  %s1045_s5 = inlined_call_operand.hbm [shape: bf16[2,64,128], index: 5, kind: output, shape index: {}]  }
   0x1   :  { %12 = vsyncpa [#allocation3 + $0x1], 0 }
   0x2   :  { %13 = vsyncpa [#allocation6], 0 }
   0x3   :  { %14 = vsyncpa [#allocation4], 0 }
   0x4   :  { %16 = vsyncpa [#allocation4 + $0x1], 0  ;;  %s888_s18 = smov 0   ;;  %s890_s19 = smov 0  }
   0x5   :  { %s892_s20 = smov 0   ;;  %s894_s21 = smov 0  }
   0x6 LB: > { %s909_s22 = sadd.s32 4294967295, %s848_s21   ;;  %s570_s23 = sadd.s32 4294967294, %s848_s21   ;;  %s848_s21 = sphi %s894_s21, %s1055_s21   ;;  %s844_s20 = sphi %s892_s20, %s1054_s20   ;;  %s840_s19 = sphi %s890_s19, %s1053_s19   ;;  %s836_s18 = sphi %s888_s18, %s1052_s18  }
   0x7   : > { %p42_p0 = scmp.ne.s32.totalorder %s840_s19, %s836_s18  ;;  %p43_p1 = scmp.eq.s32.totalorder %s909_s22, 0 }
   0x8   : > { %p150_p2 = scmp.eq.s32.totalorder %s909_s22, 1  ;;  %p156_p3 = scmp.eq.s32.totalorder %s570_s23, 1 }
   0x9   : > { %p918_p4 = por %p43_p1, %p42_p0  ;;  %p571_p5 = scmp.ge.s32.totalorder %s848_s21, 1 }
   0xa   : > { %p923_p6 = por %p156_p3, %p42_p0  ;;  %p163_p7 = scmp.lt.s32.totalorder %s848_s21, 3 }
   0xb   : > { %s174_s28 = sshll.u32 %s1041_s1, 4  ;;  %s850_s30 = smov [#allocation5]   ;;  %s175_s28 = int_to_ptr.hbm [resolvable:$true] %s174_s28 }
   0xc   : > { %p931_p8 = pnand %p571_p5, %p163_p7  ;;  %s176_s6 = sshll.u32 %s850_s30, 4  ;;  %s177_s6 = int_to_ptr.vmem [resolvable:$true] %s176_s6 }
   0xd   : > { %s941_s7 = sadd.s32 1, %s848_s21   ;;  %s851_s8 = smov 64  }
   0xe   : > { %p655_p9 = pneg %p931_p8  ;;  %s852_s9 = smov 4  }
   0xf   : > { %s26_s10 = ssub.s32 %s848_s21, %s941_s7  ;;  %s29_s11 = sadd.s32 1, %s844_s20 }
  0x10   : > { %p656_p10 = pnand %p655_p9, %p43_p1  ;;  %p27_p12 = scmp.eq.s32.totalorder %s26_s10, 0 }
  0x11   : > { %p36_p13 = scmp.ne.s32.totalorder %s844_s20, %s840_s19  ;;  %p37_p0 = scmp.eq.s32.totalorder %s848_s21, 0 }
  0x12   : > { %658 = dma.hbm_to_vmem [thread:$0]  (!%p656_p10), %s175_s28, 512, %s177_s6, [#allocation6], %s851_s8, %s851_s8, %s852_s9  }
  0x13   : > { %p668_p3 = scmp.lt.s32.totalorder %s848_s21, 2  ;;  %p38_p5 = por %p37_p0, %p36_p13 }
  0x14   : > { %s951_s12 = scalar_select %p27_p12, %s844_s20, %s29_s11  }
  0x15   : > { %p955_p7 = por %p150_p2, %p36_p13  ;;  %s199_s14 = sand.u32 1, %s844_s20  }
  0x16   : > { %s606_s15 = sshll.u32 %s848_s21, 6  ;;  %s574_s16 = sshll.u32 %s199_s14, 6 }
  0x17   : > { %s208_s26 = scalar_lea.hbm %s1040_s0, %s606_s15  ;;  %s203_s28 = scalar_lea.vmem [#allocation2], %s574_s16 }
  0x18   : > { %s209_s27 = sshll.u32 %s208_s26, 4  ;;  %s211_s30 = sshll.u32 %s203_s28, 4  ;;  %s210_s27 = int_to_ptr.hbm [resolvable:$true] %s209_s27  ;;  %s212_s30 = int_to_ptr.vmem [resolvable:$true] %s211_s30 }
  0x19   : > { %p966_p9 = pnand %p668_p3, %p38_p5  ;;  %s200_s8 = scalar_lea.sflag [#allocation3], %s199_s14 }
  0x1a   : > { %s748_s9 = sshra.s32 %s210_s27, 4  ;;  %s755_s16 = scalar_lea.hbm %s1040_s0, 128  ;;  %s749_s9 = int_to_ptr.hbm [resolvable:$true] %s748_s9 }
  0x1b   : > { %s750_s10 = scalar_lea.hbm %s749_s9, 64  ;;  %p752_p10 = pneg %p966_p9 }
  0x1c   : > { %p751_p2 = scmp.ne.s32.totalorder %s749_s9, %s750_s10  ;;  %p756_p0 = scmp.lt.s32.totalorder %s749_s9, %s1040_s0 }
  0x1d   : > { %p757_p3 = scmp.lt.s32.totalorder %s755_s16, %s750_s10 }
  0x1e   : > { %p753_p12 = pnand %p752_p10, %p751_p2 }
  0x1f   : > { %p758_p5 = por %p757_p3, %p756_p0 }
  0x20   : > { %p754_p13 = pneg %p753_p12 }
  0x22   : > { %p759_p11 = pnand %p758_p5, %p754_p13 }
  0x24   : > { %762 = shalt.err (!%p759_p11)
}
  0x25   : > { %s853_s14 = smov 128   ;;  %s854_s26 = smov 8  }
  0x26   : > { %662 = dma.hbm_to_vmem [thread:$0]  (!%p966_p9), %s210_s27, 1024, %s212_s30, %s200_s8, %s853_s14, %s853_s14, %s854_s26  }
  0x27   : > { %223 = sbr.rel (%p931_p8) target bundleno = 296 (0x128), region = 40  ;;  %s983_s28 = sand.u32 (!%p931_p8), 1, %s840_s19  }
  0x28   : > { %s578_s11 = sshll.u32 (!%p931_p8), %s983_s28, 6  ;;  %s226_s9 = scalar_lea.sflag (!%p931_p8), [#allocation3], %s983_s28 }
  0x29   : > { %s229_s10 = scalar_lea.vmem (!%p931_p8), [#allocation2], %s578_s11 }
  0x2c   : > { %823 = dma.done.wait (%p918_p4), %s226_s9, 1024  }
  0x2d   : > { %825 = vsyncadd (%p918_p4), %s226_s9, 4294966272 }
  0x2e   : > { %827 = dma.done.wait (%p43_p1), [#allocation6], 512  }
  0x2f   : > { %829 = vsyncadd (%p43_p1), [#allocation6], 4294966784  ;;  %v610_v0 = vld [vmem:[#allocation5 + $0x18] sm:$0xff]  ;;  %v609_v1 = vld [vmem:[#allocation5 + $0x10] sm:$0xff]  ;;  %vm311_vm0 = vcmask 523264   ;;  %v855_v24 = vmov 64.0  }
  0x30   : > { %328 = vmatpush.bf16.msra.mxu0 %v610_v0  ;;  %635 = vmatpush.bf16.msra.mxu1 %v610_v0  ;;  %v608_v2 = vld [vmem:[#allocation5 + $0x8] sm:$0xff]  ;;  %v607_v3 = vld [vmem:[#allocation5] sm:$0xff]  ;;  %v265_v6 = vld [vmem:[%s229_s10 + $0x10] sm:$0xff]  ;;  %714 = vrcp.f32 %v855_v24  ;;  %s580_s15 = sshll.u32 %s983_s28, 5  ;;  %s611_s16 = sshll.u32 %s909_s22, 5 }
  0x31   : > { %636 = vmatpush.bf16.msra.mxu2 %v610_v0  ;;  %637 = vmatpush.bf16.msra.mxu3 %v610_v0  ;;  %v263_v4 = vld [vmem:[%s229_s10] sm:$0xff]  ;;  %v264_v5 = vld [vmem:[%s229_s10 + $0x8] sm:$0xff]  ;;  %v266_v7 = vld [vmem:[%s229_s10 + $0x18] sm:$0xff]  ;;  %s483_s14 = scalar_lea.hbm %s1045_s5, %s611_s16  ;;  %s261_s22 = scalar_lea.vmem [#allocation7], %s580_s15 }
  0x32   : > { %v267_v8 = vld [vmem:[%s229_s10 + $0x20] sm:$0xff]  ;;  %v268_v9 = vld [vmem:[%s229_s10 + $0x28] sm:$0xff]  ;;  %v269_v10 = vld [vmem:[%s229_s10 + $0x30] sm:$0xff]  ;;  %v271_v12 = vpack.c.bf16 %v264_v5, %v263_v4  ;;  %v272_v13 = vpack.c.bf16 %v266_v7, %v265_v6  ;;  %s484_s26 = sshll.u32 %s261_s22, 4  ;;  %s486_s11 = sshll.u32 %s483_s14, 4  ;;  %s485_s26 = int_to_ptr.vmem [resolvable:$true] %s484_s26  ;;  %s487_s11 = int_to_ptr.hbm [resolvable:$true] %s486_s11 }
  0x33   : > { %v270_v11 = vld [vmem:[%s229_s10 + $0x38] sm:$0xff]  ;;  %v273_v14 = vpack.c.bf16 %v268_v9, %v267_v8  ;;  %v711_v18 = vld [vmem:[%s1042_s2] ss:$0 sm:$0xff]  ;;  %s472_s9 = scalar_lea.sflag [#allocation4], %s983_s28  ;;  %s792_s10 = sshra.s32 %s487_s11, 4  ;;  %s793_s10 = int_to_ptr.hbm [resolvable:$true] %s792_s10 }
  0x34   : > { %329 = vmatpush.bf16.msra.mxu0 %v609_v1  ;;  %638 = vmatpush.bf16.msra.mxu1 %v609_v1  ;;  %v274_v15 = vpack.c.bf16 %v270_v11, %v269_v10  ;;  %s794_s24 = scalar_lea.hbm %s793_s10, 32  ;;  %s798_s30 = scalar_lea.hbm %s1045_s5, 64 }
  0x35   : > { %639 = vmatpush.bf16.msra.mxu2 %v609_v1  ;;  %640 = vmatpush.bf16.msra.mxu3 %v609_v1  ;;  %p795_p1 = scmp.ne.s32.totalorder %s793_s10, %s794_s24  ;;  %p799_p11 = scmp.lt.s32.totalorder %s793_s10, %s1045_s5 }
  0x36   : > { %v715_v30 = vpop.eup %714  ;;  %p800_p9 = scmp.lt.s32.totalorder %s798_s30, %s794_s24 }
  0x37   : > { %v367_v37 = vmul.f32 64.0, %v715_v30  ;;  %vm371_vm1 = vweird.f32 %v715_v30  ;;  %p796_p4 = pnand %p795_p1, %p955_p7 }
  0x38   : > { %330 = vmatpush.bf16.msra.mxu0 %v608_v2  ;;  %641 = vmatpush.bf16.msra.mxu1 %v608_v2  ;;  %p801_p2 = por %p800_p9, %p799_p11 }
  0x39   : > { %642 = vmatpush.bf16.msra.mxu2 %v608_v2  ;;  %643 = vmatpush.bf16.msra.mxu3 %v608_v2  ;;  %v368_v42 = vsub.f32 1.0, %v367_v37  ;;  %p797_p8 = pneg %p796_p4 }
  0x3b   : > { %v369_v45 = vmul.f32 %v715_v30, %v368_v42  ;;  %p802_p10 = pnand %p801_p2, %p797_p8 }
  0x3c   : > { %331 = vmatpush.bf16.msra.mxu0 %v607_v3  ;;  %644 = vmatpush.bf16.msra.mxu1 %v607_v3 }
  0x3d   : > { %645 = vmatpush.bf16.msra.mxu2 %v607_v3  ;;  %646 = vmatpush.bf16.msra.mxu3 %v607_v3  ;;  %v370_v48 = vadd.f32 %v715_v30, %v369_v45 }
  0x3f   : > { %597 = vmatmul.msk.bf16.vlgmr.msra.gmra.mxu0 %vm311_vm0, %v271_v12  ;;  %598 = vmatmul.msk.bf16.vlgmr.msra.gmra.mxu1 %vm311_vm0, %v272_v13  ;;  %v372_v51 = vsel %vm371_vm1, %v715_v30, %v370_v48 }
  0x40   : > { %599 = vmatmul.msk.bf16.vlgmr.msra.gmra.mxu2 %vm311_vm0, %v273_v14  ;;  %600 = vmatmul.msk.bf16.vlgmr.msra.gmra.mxu3 %vm311_vm0, %v274_v15 }
  0xbc   : > { %v333_v16 = vpop.f32.mrf.mxu0  ;;  %v338_v17 = vpop.f32.mrf.mxu1 }
  0xbd   : > { %v334_v22 = vadd.f32 %v711_v18, %v333_v16  ;;  %v339_v26 = vadd.f32 %v711_v18, %v338_v17 }
  0xc3   : > { %v343_v19 = vpop.f32.mrf.mxu2  ;;  %v348_v20 = vpop.f32.mrf.mxu3 }
  0xc4   : > { %v335_v21 = vpop.f32.mrf.mxu0  ;;  %v340_v25 = vpop.f32.mrf.mxu1  ;;  %v344_v31 = vadd.f32 %v711_v18, %v343_v19  ;;  %v349_v38 = vadd.f32 %v711_v18, %v348_v20 }
  0xc5   : > { %v336_v23 = vadd.f32 %v711_v18, %v335_v21  ;;  %v341_v28 = vadd.f32 %v711_v18, %v340_v25 }
  0xc7   : > { %v353_v27 = vadd.f32 %v336_v23, %v334_v22 }
  0xc9   : > { %v354_v29 = vadd.f32 %v353_v27, %v339_v26  ;;  %v712_v27 = vld [vmem:[%s1043_s3] ss:$0 sm:$0xff] }
  0xcb   : > { %v355_v32 = vadd.f32 %v354_v29, %v341_v28  ;;  %v345_v33 = vpop.f32.mrf.mxu2  ;;  %v350_v36 = vpop.f32.mrf.mxu3 }
  0xcc   : > { %v346_v34 = vadd.f32 %v711_v18, %v345_v33  ;;  %v351_v40 = vadd.f32 %v711_v18, %v350_v36  ;;  %v713_v33 = vld [vmem:[%s1044_s4] ss:$0 sm:$0xff] }
  0xcd   : > { %v356_v35 = vadd.f32 %v355_v32, %v344_v31 }
  0xcf   : > { %v357_v39 = vadd.f32 %v356_v35, %v346_v34 }
  0xd1   : > { %v358_v41 = vadd.f32 %v357_v39, %v349_v38 }
  0xd3   : > { %v359_v43 = vadd.f32 %v358_v41, %v351_v40 }
  0xd5   : > { %v360_v44 = vrot.slane %v359_v43, 4 }
  0xd7   : > { %v361_v46 = vadd.f32 %v360_v44, %v359_v43 }
  0xd9   : > { %v362_v47 = vrot.slane %v361_v46, 2 }
  0xdb   : > { %v363_v49 = vadd.f32 %v362_v47, %v361_v46 }
  0xdd   : > { %v364_v50 = vrot.slane %v363_v49, 1 }
  0xdf   : > { %v365_v52 = vadd.f32 %v364_v50, %v363_v49 }
  0xe1   : > { %v373_v53 = vmul.f32 %v372_v51, %v365_v52 }
  0xe3   : > { %v374_v54 = vsub.f32 %v334_v22, %v373_v53  ;;  %v375_v55 = vsub.f32 %v336_v23, %v373_v53  ;;  %v376_v56 = vsub.f32 %v339_v26, %v373_v53  ;;  %v377_v57 = vsub.f32 %v341_v28, %v373_v53 }
  0xe4   : > { %v378_v60 = vsub.f32 %v344_v31, %v373_v53  ;;  %v379_v63 = vsub.f32 %v346_v34, %v373_v53  ;;  %v380_v2 = vsub.f32 %v349_v38, %v373_v53  ;;  %v381_v5 = vsub.f32 %v351_v40, %v373_v53 }
  0xe5   : > { %v382_v58 = vmul.f32 %v374_v54, %v374_v54  ;;  %v383_v59 = vmul.f32 %v375_v55, %v375_v55  ;;  %v384_v61 = vmul.f32 %v376_v56, %v376_v56  ;;  %v385_v0 = vmul.f32 %v377_v57, %v377_v57 }
  0xe6   : > { %v386_v3 = vmul.f32 %v378_v60, %v378_v60  ;;  %v387_v6 = vmul.f32 %v379_v63, %v379_v63  ;;  %v388_v8 = vmul.f32 %v380_v2, %v380_v2  ;;  %v389_v10 = vmul.f32 %v381_v5, %v381_v5 }
  0xe7   : > { %v390_v62 = vadd.f32 %v383_v59, %v382_v58 }
  0xe9   : > { %v391_v1 = vadd.f32 %v390_v62, %v384_v61 }
  0xeb   : > { %v392_v4 = vadd.f32 %v391_v1, %v385_v0 }
  0xed   : > { %v393_v7 = vadd.f32 %v392_v4, %v386_v3 }
  0xef   : > { %v394_v9 = vadd.f32 %v393_v7, %v387_v6 }
  0xf1   : > { %v395_v11 = vadd.f32 %v394_v9, %v388_v8 }
  0xf3   : > { %v396_v12 = vadd.f32 %v395_v11, %v389_v10 }
  0xf5   : > { %v397_v13 = vrot.slane %v396_v12, 4 }
  0xf7   : > { %v398_v14 = vadd.f32 %v397_v13, %v396_v12 }
  0xf9   : > { %v399_v15 = vrot.slane %v398_v14, 2 }
  0xfb   : > { %v400_v16 = vadd.f32 %v399_v15, %v398_v14 }
  0xfd   : > { %v401_v17 = vrot.slane %v400_v16, 1 }
  0xff   : > { %v402_v18 = vadd.f32 %v401_v17, %v400_v16 }
 0x101   : > { %v403_v19 = vmul.f32 %v402_v18, %v372_v51 }
 0x103   : > { %v404_v20 = vadd.f32 1e-05, %v403_v19 }
 0x105   : > { %716 = vrsqrt.f32 %v404_v20  ;;  %vm411_vm3 = vweird.f32 %v404_v20 }
 0x10b   : > { %v717_v21 = vpop.eup %716 }
 0x10c   : > { %v406_v22 = vmul.f32 %v717_v21, %v404_v20  ;;  %vm412_vm2 = vweird.f32 %v717_v21 }
 0x10d   : > { %vm413_vm4 = vmor %vm411_vm3, %vm412_vm2 }
 0x10e   : > { %v407_v23 = vmul.f32 %v717_v21, %v406_v22 }
 0x110   : > { %v408_v24 = vmul.f32 0.5, %v407_v23 }
 0x112   : > { %v409_v25 = vsub.f32 1.5, %v408_v24 }
 0x114   : > { %v410_v26 = vmul.f32 %v717_v21, %v409_v25 }
 0x116   : > { %v414_v28 = vsel %vm413_vm4, %v717_v21, %v410_v26 }
 0x117   : > { %v415_v29 = vmul.f32 %v414_v28, %v374_v54  ;;  %v416_v30 = vmul.f32 %v414_v28, %v375_v55  ;;  %v417_v31 = vmul.f32 %v414_v28, %v376_v56  ;;  %v418_v32 = vmul.f32 %v414_v28, %v377_v57 }
 0x118   : > { %v419_v34 = vmul.f32 %v414_v28, %v378_v60  ;;  %v420_v35 = vmul.f32 %v414_v28, %v379_v63  ;;  %v421_v36 = vmul.f32 %v414_v28, %v380_v2  ;;  %v422_v37 = vmul.f32 %v414_v28, %v381_v5 }
 0x119   : > { %v427_v38 = vmul.f32 %v712_v27, %v415_v29  ;;  %v428_v39 = vmul.f32 %v712_v27, %v416_v30  ;;  %v429_v40 = vmul.f32 %v712_v27, %v417_v31  ;;  %v430_v41 = vmul.f32 %v712_v27, %v418_v32 }
 0x11a   : > { %v431_v42 = vmul.f32 %v712_v27, %v419_v34  ;;  %v432_v43 = vmul.f32 %v712_v27, %v420_v35  ;;  %v433_v44 = vmul.f32 %v712_v27, %v421_v36  ;;  %v434_v45 = vmul.f32 %v712_v27, %v422_v37 }
 0x11b   : > { %v439_v46 = vadd.f32 %v713_v33, %v427_v38  ;;  %v440_v47 = vadd.f32 %v713_v33, %v428_v39  ;;  %v441_v48 = vadd.f32 %v713_v33, %v429_v40  ;;  %v442_v49 = vadd.f32 %v713_v33, %v430_v41 }
 0x11c   : > { %v443_v50 = vadd.f32 %v713_v33, %v431_v42  ;;  %v444_v51 = vadd.f32 %v713_v33, %v432_v43  ;;  %v445_v52 = vadd.f32 %v713_v33, %v433_v44  ;;  %v446_v53 = vadd.f32 %v713_v33, %v434_v45 }
 0x11d   : > { %v447_v54 = vmax.f32 %v439_v46, 0.0  ;;  %v448_v55 = vmax.f32 %v440_v47, 0.0  ;;  %v449_v56 = vmax.f32 %v441_v48, 0.0  ;;  %v450_v57 = vmax.f32 %v442_v49, 0.0 }
 0x11e   : > { %v451_v58 = vmax.f32 %v443_v50, 0.0  ;;  %v452_v59 = vmax.f32 %v444_v51, 0.0  ;;  %v453_v60 = vmax.f32 %v445_v52, 0.0  ;;  %v454_v61 = vmax.f32 %v446_v53, 0.0 }
 0x11f   : > { %v620_v62 = vpack.c.bf16 %v450_v57, %v449_v56  ;;  %v615_v1 = vpack.c.bf16 %v448_v55, %v447_v54 }
 0x120   : > { %v625_v63 = vpack.c.bf16 %v452_v59, %v451_v58  ;;  %v630_v0 = vpack.c.bf16 %v454_v61, %v453_v60 }
 0x121   : > { %632 = vst [vmem:[%s261_s22 + $0x8] sm:$0xff] %v620_v62  }
 0x122   : > { %634 = vst [vmem:[%s261_s22 + $0x18] sm:$0xff] %v630_v0  }
 0x123   : > { %633 = vst [vmem:[%s261_s22 + $0x10] sm:$0xff] %v625_v63  }
 0x124   : > { %616 = vst [vmem:[%s261_s22] sm:$0xff] %v615_v1  }
 0x125   : > { %805 = shalt.err (!%p802_p10)
}
 0x126   : > { %s856_s28 = smov 64   ;;  %s857_s15 = smov 4  }
 0x127   : > { %653 = dma.vmem_to_hbm [thread:$0]  (%p955_p7), %s485_s26, 512, %s487_s11, %s472_s9, %s856_s28, %s856_s28, %s857_s15  }
 0x128 PF: > { %s501_s16 = sand.u32 1, %s836_s18   ;;  %p1051_p12 = scmp.ge.s32.totalorder %s848_s21, 2 }
 0x129   : > { %s502_s17 = scalar_lea.sflag [#allocation4], %s501_s16 }
 0x12a   : > { %p664_p13 = pnand %p1051_p12, %p923_p6 }
 0x12c   : > { %p665_p0 = pneg %p664_p13 }
 0x12e   : > { %831 = dma.done.wait (%p665_p0), %s502_s17, 512  }
 0x12f   : > { %833 = vsyncadd (%p665_p0), %s502_s17, 4294966784  ;;  %p19_p3 = scmp.ge.s32.totalorder %s941_s7, 4   ;;  %s1052_s18 = smov %s840_s19 }
 0x130   : > { %s1053_s19 = smov %s844_s20  ;;  %s1054_s20 = smov %s951_s12 }
 0x131   : > { %s1055_s21 = smov %s941_s7  ;;  %21 = sbr.rel (!%p19_p3) target bundleno = 6 (0x6), region = 89 }
 0x136   :  { %508 = vsyncpa [#allocation3], 1 }
 0x137   :  { %510 = vsyncpa [#allocation3 + $0x1], 1 }
 0x138   :  { %511 = vsyncpa [#allocation6], 1 }
 0x139   :  { %512 = vsyncpa [#allocation4], 1 }
 0x13a   :  { %514 = vsyncpa [#allocation4 + $0x1], 1 }

</bundles_post_ra>
